<compile_context>
chip_gen: v6e
topology: v6e:2x2x1
jax: 0.10.0
libtpu: 0.0.40
codegen_flags: <defaults>
</compile_context>

<pallas_src>
import jax
import jax.numpy as jnp
from jax.experimental import pallas as pl
from jax.experimental.pallas import tpu as pltpu


_TILE_CAP = 64 * 1024   # max lanes per HW tile (f32: ~12 MiB double-buffered)
_TINY_TOTAL = 8 * 1024  # N*HW below this -> single grid step over everything


def _cdiv(a, b):
    return -(-a // b)


def _convt1x1_sigmoid_kernel(x_ref, w_ref, b_ref, o_ref):
    # x_ref: (NB, C_in, tile_hw)  channels on sublanes, pixels on lanes
    # w_ref: (C_out, C_in)        transposed ConvTranspose2d weight
    # b_ref: (C_out, 1)           broadcast over the lane (pixel) axis
    # o_ref: (NB, C_out, tile_hw) lane-dense output block
    w = w_ref[...]
    b = b_ref[...]
    # NB is static and tiny (1 for large inputs; N only on the tiny path).
    for n in range(x_ref.shape[0]):
        acc = jnp.dot(w, x_ref[n], preferred_element_type=jnp.float32)
        acc = acc + b
        # sigmoid(x) == 0.5 * tanh(0.5 * x) + 0.5 : one EUP push per vreg,
        # mul/add ride the idle VALU slots; saturates cleanly for large |x|.
        o_ref[n] = (0.5 * jnp.tanh(0.5 * acc) + 0.5).astype(o_ref.dtype)


def _plan_blocks(N, HW):
    """Returns (batch_block, hw_tile, grid)."""
    # Tiny problem: one grid step over the whole (N, C_in, HW) tensor
    # (launch overhead dominates at this size).
    if N * HW <= _TINY_TOTAL:
        return N, HW, (1, 1)
    # HW too small to tile by 128: full-extent HW block, one tile per batch.
    if HW <= 128:
        return 1, HW, (N, 1)
    # Large problem: one batch element per step, HW tiled in 128 multiples.
    tile_hw = max(128, (min(HW, _TILE_CAP) // 128) * 128)
    n_hw = _cdiv(HW, tile_hw)
    # v7x has 2 TensorCores: never let the grid degenerate to a single step.
    if N * n_hw < 2:
        tile_hw = max(128, _cdiv(_cdiv(HW, 2), 128) * 128)
        n_hw = _cdiv(HW, tile_hw)
    return 1, tile_hw, (N, n_hw)


def conv_transpose_1x1_sigmoid(x_nchw, weight, bias):
    """sigmoid(ConvTranspose2d(C_in->C_out, k=1, s=1, p=0)(x)).

    x_nchw: (N, C_in, H, W)
    weight: (C_in, C_out)   (PyTorch ConvTranspose2d weight (Cin, Cout, 1, 1) squeezed)
    bias:   (C_out,)
    """
    N, C_in, H, W = x_nchw.shape
    C_out = weight.shape[1]
    HW = H * W

    # Pure reshapes (metadata only): NCHW is contiguous over (H, W).
    x3 = x_nchw.reshape(N, C_in, HW)
    w_t = weight.T               # (C_out, C_in) -- 48 floats, negligible
    b2 = bias.reshape(C_out, 1)

    nb, tile_hw, grid = _plan_blocks(N, HW)

    out3 = pl.pallas_call(
        _convt1x1_sigmoid_kernel,
        out_shape=jax.ShapeDtypeStruct((N, C_out, HW), x_nchw.dtype),
        grid_spec=pltpu.PrefetchScalarGridSpec(
            num_scalar_prefetch=0,
            grid=grid,
            in_specs=[
                pl.BlockSpec((nb, C_in, tile_hw), lambda n, j: (n, 0, j)),
                pl.BlockSpec((C_out, C_in), lambda n, j: (0, 0)),
                pl.BlockSpec((C_out, 1), lambda n, j: (0, 0)),
            ],
            out_specs=pl.BlockSpec((nb, C_out, tile_hw), lambda n, j: (n, 0, j)),
        ),
        compiler_params=pltpu.CompilerParams(
            dimension_semantics=("parallel", "parallel"),
        ),
    )(x3, w_t, b2)

    # Pure reshape back to NCHW.
    return out3.reshape(N, C_out, H, W)


def _reference(x, weight, bias):
    return jax.nn.sigmoid(
        jnp.einsum("nihw,io->nohw", x, weight) + bias[None, :, None, None]
    )


if __name__ == "__main__":
    key = jax.random.PRNGKey(0)
    k_x, k_w, k_b, k_x2 = jax.random.split(key, 4)

    C_in, C_out = 3, 16
    # ConvTranspose2d weight is (C_in, C_out, 1, 1) -> stored here as (C_in, C_out)
    weight = jax.random.normal(k_w, (C_in, C_out), dtype=jnp.float32) * 0.1
    bias = jax.random.normal(k_b, (C_out,), dtype=jnp.float32) * 0.1

    # Small shape consistent with the module (exercises the single-step tiny path).
    N, H, W = 2, 16, 16
    x = jax.random.normal(k_x, (N, C_in, H, W), dtype=jnp.float32)
    out = jax.block_until_ready(conv_transpose_1x1_sigmoid(x, weight, bias))
    ref = _reference(x, weight, bias)
    assert out.shape == (N, C_out, H, W)
    assert jnp.allclose(out, ref, atol=1e-4, rtol=1e-4), float(
        jnp.max(jnp.abs(out - ref))
    )

    # Second, slightly larger case with non-128-multiple HW: exercises the
    # cdiv-tiled path (grid=(1,2), masked final tile) without any fallback.
    x2 = jax.random.normal(k_x2, (1, C_in, 100, 100), dtype=jnp.float32)
    out2 = jax.block_until_ready(conv_transpose_1x1_sigmoid(x2, weight, bias))
    ref2 = _reference(x2, weight, bias)
    assert out2.shape == (1, C_out, 100, 100)
    assert jnp.allclose(out2, ref2, atol=1e-4, rtol=1e-4), float(
        jnp.max(jnp.abs(out2 - ref2))
    )

    print("KERNEL_OK")
</pallas_src>

<mosaic_0001>
module attributes {stable_mosaic.version = 11 : i64} {
  func.func @_convt1x1_sigmoid_kernel(%arg0: i32, %arg1: i32, %arg2: memref<2x3x256xf32, #tpu.memory_space<vmem>>, %arg3: memref<16x3xf32, #tpu.memory_space<vmem>>, %arg4: memref<16x1xf32, #tpu.memory_space<vmem>>, %arg5: memref<2x16x256xf32, #tpu.memory_space<vmem>>) attributes {dimension_semantics = [#tpu.dimension_semantics<parallel>, #tpu.dimension_semantics<parallel>], iteration_bounds = array<i64: 1, 1>, scalar_prefetch = 0 : i64, scratch_operands = 0 : i64, tpu.core_type = #tpu.core_type<tc>, window_params = [{transform_indices = @transform_0, window_bounds = array<i64: 2, 3, 256>}, {pipeline_mode = #tpu.pipeline_mode<synchronous>, transform_indices = @transform_1, window_bounds = array<i64: 16, 3>}, {pipeline_mode = #tpu.pipeline_mode<synchronous>, transform_indices = @transform_2, window_bounds = array<i64: 16, 1>}, {transform_indices = @transform_3, window_bounds = array<i64: 2, 16, 256>}]} {
    %c0 = arith.constant 0 : index
    %c0_0 = arith.constant 0 : index
    %0 = vector.load %arg3[%c0, %c0_0] : memref<16x3xf32, #tpu.memory_space<vmem>>, vector<16x3xf32>
    %c0_1 = arith.constant 0 : index
    %c0_2 = arith.constant 0 : index
    %1 = vector.load %arg4[%c0_1, %c0_2] : memref<16x1xf32, #tpu.memory_space<vmem>>, vector<16x1xf32>
    %c0_3 = arith.constant 0 : index
    %c0_4 = arith.constant 0 : index
    %c0_5 = arith.constant 0 : index
    %2 = vector.load %arg2[%c0_3, %c0_4, %c0_5] : memref<2x3x256xf32, #tpu.memory_space<vmem>>, vector<1x3x256xf32>
    %3 = vector.shape_cast %2 : vector<1x3x256xf32> to vector<3x256xf32>
    %cst = arith.constant dense<0.000000e+00> : vector<16x256xf32>
    %4 = tpu.matmul %0, %3, %cst {dimension_numbers = #tpu.dot_dimension_numbers<[1], [0], [0], [1], [0, 0, 1, 1], [], []>} : vector<16x3xf32>, vector<3x256xf32>, vector<16x256xf32> -> vector<16x256xf32>
    %5 = vector.broadcast %1 : vector<16x1xf32> to vector<16x256xf32>
    %6 = arith.addf %4, %5 : vector<16x256xf32>
    %cst_6 = arith.constant 5.000000e-01 : f32
    %7 = vector.broadcast %cst_6 : f32 to vector<16x256xf32>
    %8 = arith.mulf %7, %6 : vector<16x256xf32>
    %9 = math.tanh %8 : vector<16x256xf32>
    %cst_7 = arith.constant 5.000000e-01 : f32
    %10 = vector.broadcast %cst_7 : f32 to vector<16x256xf32>
    %11 = arith.mulf %10, %9 : vector<16x256xf32>
    %cst_8 = arith.constant 5.000000e-01 : f32
    %12 = vector.broadcast %cst_8 : f32 to vector<16x256xf32>
    %13 = arith.addf %11, %12 : vector<16x256xf32>
    %c0_9 = arith.constant 0 : index
    %c0_10 = arith.constant 0 : index
    %c0_11 = arith.constant 0 : index
    %14 = vector.load %arg5[%c0_9, %c0_10, %c0_11] : memref<2x16x256xf32, #tpu.memory_space<vmem>>, vector<1x16x256xf32>
    %15 = vector.shape_cast %14 : vector<1x16x256xf32> to vector<16x256xf32>
    %16 = vector.shape_cast %13 : vector<16x256xf32> to vector<1x16x256xf32>
    tpu.vector_store %arg5[%c0_9, %c0_10, %c0_11], %16 {strides = array<i32>} : memref<2x16x256xf32, #tpu.memory_space<vmem>>, vector<1x16x256xf32>,
    %c1 = arith.constant 1 : index
    %c0_12 = arith.constant 0 : index
    %c0_13 = arith.constant 0 : index
    %17 = vector.load %arg2[%c1, %c0_12, %c0_13] : memref<2x3x256xf32, #tpu.memory_space<vmem>>, vector<1x3x256xf32>
    %18 = vector.shape_cast %17 : vector<1x3x256xf32> to vector<3x256xf32>
    %cst_14 = arith.constant dense<0.000000e+00> : vector<16x256xf32>
    %19 = tpu.matmul %0, %18, %cst_14 {dimension_numbers = #tpu.dot_dimension_numbers<[1], [0], [0], [1], [0, 0, 1, 1], [], []>} : vector<16x3xf32>, vector<3x256xf32>, vector<16x256xf32> -> vector<16x256xf32>
    %20 = vector.broadcast %1 : vector<16x1xf32> to vector<16x256xf32>
    %21 = arith.addf %19, %20 : vector<16x256xf32>
    %cst_15 = arith.constant 5.000000e-01 : f32
    %22 = vector.broadcast %cst_15 : f32 to vector<16x256xf32>
    %23 = arith.mulf %22, %21 : vector<16x256xf32>
    %24 = math.tanh %23 : vector<16x256xf32>
    %cst_16 = arith.constant 5.000000e-01 : f32
    %25 = vector.broadcast %cst_16 : f32 to vector<16x256xf32>
    %26 = arith.mulf %25, %24 : vector<16x256xf32>
    %cst_17 = arith.constant 5.000000e-01 : f32
    %27 = vector.broadcast %cst_17 : f32 to vector<16x256xf32>
    %28 = arith.addf %26, %27 : vector<16x256xf32>
    %c1_18 = arith.constant 1 : index
    %c0_19 = arith.constant 0 : index
    %c0_20 = arith.constant 0 : index
    %29 = vector.load %arg5[%c1_18, %c0_19, %c0_20] : memref<2x16x256xf32, #tpu.memory_space<vmem>>, vector<1x16x256xf32>
    %30 = vector.shape_cast %29 : vector<1x16x256xf32> to vector<16x256xf32>
    %31 = vector.shape_cast %28 : vector<16x256xf32> to vector<1x16x256xf32>
    tpu.vector_store %arg5[%c1_18, %c0_19, %c0_20], %31 {strides = array<i32>} : memref<2x16x256xf32, #tpu.memory_space<vmem>>, vector<1x16x256xf32>,
    return
  }
  func.func @transform_0(%arg0: i32, %arg1: i32) -> (i32, i32, i32) {
    %c0_i32 = arith.constant 0 : i32
    %c0_i32_0 = arith.constant 0 : i32
    return %arg0, %c0_i32, %arg1 : i32, i32, i32
  }
  func.func @transform_1(%arg0: i32, %arg1: i32) -> (i32, i32) {
    %c0_i32 = arith.constant 0 : i32
    %c0_i32_0 = arith.constant 0 : i32
    %c0_i32_1 = arith.constant 0 : i32
    return %c0_i32, %c0_i32_0 : i32, i32
  }
  func.func @transform_2(%arg0: i32, %arg1: i32) -> (i32, i32) {
    %c0_i32 = arith.constant 0 : i32
    %c0_i32_0 = arith.constant 0 : i32
    %c0_i32_1 = arith.constant 0 : i32
    return %c0_i32, %c0_i32_0 : i32, i32
  }
  func.func @transform_3(%arg0: i32, %arg1: i32) -> (i32, i32, i32) {
    %c0_i32 = arith.constant 0 : i32
    %c0_i32_0 = arith.constant 0 : i32
    return %arg0, %c0_i32, %arg1 : i32, i32, i32
  }
}

</mosaic_0001>

<bundles_post_ra>
// kernel: tpu_custom_call.1
= control target key start
LH: loop header
LB: loop body
LE: loop exit
PB: predicated region body
PF: predicated region fallthrough
CT: control target
= control target key end

     0   :  { %vm39_vm0 = vcmask 1042432   ;;  %v318_v4 = vmov 0.0   ;;  %vm32_vm1 = vcmask 23552   ;;  %v319_v6 = vmov 0   ;;  %s368_s0 = inlined_call_operand.vmem [shape: f32[2,3,256], index: 0, kind: input, shape index: {}]   ;;  %s369_s1 = inlined_call_operand.vmem [shape: f32[16,3], index: 1, kind: input, shape index: {}]   ;;  %s370_s2 = inlined_call_operand.vmem [shape: f32[16,1], index: 2, kind: input, shape index: {}]   ;;  %s371_s3 = inlined_call_operand.hbm [shape: f32[2,16,256], index: 3, kind: output, shape index: {}]  }
   0x1   :  { %v19_v0 = vld [vmem:[%s368_s0] sm:$0x77]  ;;  %v267_v1 = vld [vmem:[%s368_s0 + $0x8] sm:$0x77]  ;;  %108 = vmatprep.mubr.f32.mxu0 %v318_v4  ;;  %213 = vmatprep.mubr.f32.mxu1 %v318_v4 }
   0x2   :  { %v31_v2 = vcombine.high %v19_v0, %v19_v0  ;;  %v144_v3 = vcombine.high %v267_v1, %v267_v1  ;;  %v15_v5 = vld [vmem:[%s369_s1] sm:$0xff]  ;;  %277 = vset.pattern.permute.xlu0 %v319_v6 }
   0x3   :  { %8 = vsyncpa [#allocation3], 0  ;;  %v17_v7 = vld [vmem:[%s370_s2] sm:$0xff]  ;;  %v16_v8 = vld [vmem:[%s369_s1 + $0x8] sm:$0xff]  ;;  %s320_s1 = smov [#allocation2]  }
   0x4   :  { %263 = vmatprep.subr.msk.mxu0 %vm39_vm0, %v31_v2  ;;  %268 = vmatprep.subr.msk.mxu1 %vm39_vm0, %v144_v3  ;;  %v18_v9 = vld [vmem:[%s370_s2 + $0x8] sm:$0xff]  ;;  %s252_s2 = sshll.u32 %s320_s1, 4  ;;  %s253_s2 = int_to_ptr.vmem [resolvable:$true] %s252_s2 }
   0x5   :  { %264 = vmatpush1.msk.msra.mxu0 %vm39_vm0, %v19_v0  ;;  %269 = vmatpush1.msk.msra.mxu1 %vm39_vm0, %v267_v1  ;;  %s296_s23 = scalar_lea.vmem %s253_s2, 1024  ;;  %p301_p1 = scmp.lt.s32.totalorder %s253_s2, %s253_s2 }
   0x6   :  { %265 = vmatmul.mubr.msk.f32.vlgmr.msra.gmra.mxu0 %vm32_vm1, %v15_v5  ;;  %270 = vmatmul.mubr.msk.f32.vlgmr.msra.gmra.mxu1 %vm32_vm1, %v15_v5  ;;  %p297_p0 = scmp.ne.s32.totalorder %s253_s2, %s296_s23  ;;  %p302_p2 = scmp.lt.s32.totalorder %s296_s23, %s296_s23 }
   0x7   :  { %114 = vmatprep.mubr.f32.mxu0 %v318_v4  ;;  %219 = vmatprep.mubr.f32.mxu1 %v318_v4 }
   0x8   :  { %22 = vperm.xlu0 %277, %v17_v7   ;;  %p303_p3 = por %p302_p2, %p301_p1 }
   0xa   :  { %266 = vmatmul.mubr.msk.f32.gmra.mxu0 %vm32_vm1, %v16_v8  ;;  %271 = vmatmul.mubr.msk.f32.gmra.mxu1 %vm32_vm1, %v16_v8  ;;  %p304_p4 = pnand %p303_p3, %p297_p0 }
   0xc   :  { %27 = vperm.xlu0 %277, %v18_v9  }
  0x83   :  { %v23_v10 = vpop.permute.xlu0 %22 }
  0x87   :  { %v28_v19 = vpop.permute.xlu0 %27 }
  0xc6   :  { %v110_v11 = vpop.f32.mrf.mxu0  ;;  %v215_v12 = vpop.f32.mrf.mxu1 }
  0xc7   :  { %v111_v13 = vadd.f32 %v110_v11, %v23_v10  ;;  %v216_v14 = vadd.f32 %v215_v12, %v23_v10 }
  0xc8   :  { %v112_v15 = vpop.f32.mrf.mxu0  ;;  %v217_v16 = vpop.f32.mrf.mxu1 }
  0xc9   :  { %v121_v17 = vmul.f32 0.5, %v111_v13  ;;  %v226_v18 = vmul.f32 0.5, %v216_v14  ;;  %v113_v20 = vadd.f32 %v112_v15, %v23_v10  ;;  %v218_v21 = vadd.f32 %v217_v16, %v23_v10 }
  0xca   :  { %v116_v22 = vpop.f32.mrf.mxu0  ;;  %v221_v23 = vpop.f32.mrf.mxu1 }
  0xcb   :  { %280 = vtanh.f32 %v121_v17  ;;  %v122_v24 = vmul.f32 0.5, %v113_v20  ;;  %v227_v25 = vmul.f32 0.5, %v218_v21  ;;  %v117_v26 = vadd.f32 %v116_v22, %v28_v19 }
  0xcc   :  { %282 = vtanh.f32 %v226_v18  ;;  %v222_v27 = vadd.f32 %v221_v23, %v28_v19  ;;  %v118_v28 = vpop.f32.mrf.mxu0  ;;  %v223_v29 = vpop.f32.mrf.mxu1 }
  0xcd   :  { %284 = vtanh.f32 %v122_v24  ;;  %v123_v30 = vmul.f32 0.5, %v117_v26  ;;  %v119_v31 = vadd.f32 %v118_v28, %v28_v19  ;;  %v224_v32 = vadd.f32 %v223_v29, %v28_v19 }
  0xce   :  { %286 = vtanh.f32 %v227_v25  ;;  %v228_v33 = vmul.f32 0.5, %v222_v27 }
  0xcf   :  { %288 = vtanh.f32 %v123_v30  ;;  %v124_v34 = vmul.f32 0.5, %v119_v31  ;;  %v229_v35 = vmul.f32 0.5, %v224_v32 }
  0xd0   :  { %290 = vtanh.f32 %v228_v33 }
  0xd1   :  { %292 = vtanh.f32 %v124_v34 }
  0xd2   :  { %294 = vtanh.f32 %v229_v35 }
  0xd8   :  { %v281_v36 = vpop.eup %280 }
  0xd9   :  { %v283_v37 = vpop.eup %282  ;;  %v129_v38 = vmul.f32 0.5, %v281_v36 }
  0xda   :  { %v285_v39 = vpop.eup %284  ;;  %v234_v40 = vmul.f32 0.5, %v283_v37 }
  0xdb   :  { %v287_v41 = vpop.eup %286  ;;  %v133_v42 = vadd.f32 0.5, %v129_v38  ;;  %v130_v43 = vmul.f32 0.5, %v285_v39 }
  0xdc   :  { %v289_v44 = vpop.eup %288  ;;  %v238_v45 = vadd.f32 0.5, %v234_v40  ;;  %v235_v46 = vmul.f32 0.5, %v287_v41 }
  0xdd   :  { %v291_v47 = vpop.eup %290  ;;  %137 = vst [vmem:[#allocation2] sm:$0xff] %v133_v42  ;;  %v134_v48 = vadd.f32 0.5, %v130_v43  ;;  %v131_v49 = vmul.f32 0.5, %v289_v44 }
  0xde   :  { %v293_v50 = vpop.eup %292  ;;  %243 = vst [vmem:[#allocation2 + $0x20] sm:$0xff] %v238_v45  ;;  %v239_v51 = vadd.f32 0.5, %v235_v46  ;;  %v236_v52 = vmul.f32 0.5, %v291_v47 }
  0xdf   :  { %v295_v53 = vpop.eup %294  ;;  %138 = vst [vmem:[#allocation2 + $0x8] sm:$0xff] %v134_v48  ;;  %v135_v54 = vadd.f32 0.5, %v131_v49  ;;  %v132_v55 = vmul.f32 0.5, %v293_v50 }
  0xe0   :  { %244 = vst [vmem:[#allocation2 + $0x28] sm:$0xff] %v239_v51  ;;  %v240_v56 = vadd.f32 0.5, %v236_v52  ;;  %v237_v57 = vmul.f32 0.5, %v295_v53 }
  0xe1   :  { %139 = vst [vmem:[#allocation2 + $0x10] sm:$0xff] %v135_v54  ;;  %v136_v58 = vadd.f32 0.5, %v132_v55 }
  0xe2   :  { %245 = vst [vmem:[#allocation2 + $0x30] sm:$0xff] %v240_v56  ;;  %v241_v59 = vadd.f32 0.5, %v237_v57 }
  0xe3   :  { %140 = vst [vmem:[#allocation2 + $0x18] sm:$0xff] %v136_v58 }
  0xe4   :  { %246 = vst [vmem:[#allocation2 + $0x38] sm:$0xff] %v241_v59 }
  0xe5   :  { %307 = shalt.err (!%p304_p4)
}
  0xe6   :  { %s321_s24 = smov 256   ;;  %s322_s25 = smov 16  }
  0xe7   :  { %258 = dma.vmem_to_hbm [thread:$0]  %s253_s2, 1024, %s371_s3, [#allocation3], %s321_s24, %s321_s24, %s322_s25  }
  0xe8   :  { %316 = dma.done.wait [#allocation3], 1024  }
  0xe9   :  { %317 = vsyncadd [#allocation3], 4294966272 }
  0xea   :  { %262 = vsyncpa [#allocation3], 1 }

</bundles_post_ra>
